<compile_context>
chip_gen: v7x
topology: tpu7x:2x2x1
jax: 0.10.0
libtpu: 0.0.40
codegen_flags: <defaults>
</compile_context>

<pallas_src>
import jax
import jax.numpy as jnp
from jax.experimental import pallas as pl
from jax.experimental.pallas import tpu as pltpu


def _make_kernel(num_features, feat_dim, hidden_dim):
    N, d, H = num_features, feat_dim, hidden_dim

    def kernel(*refs):
        feat_refs = refs[:N]
        wf_ref, bf_ref, w2_ref, b2_ref, o_ref = refs[N:]

        xs = [f[...] for f in feat_refs]                      # N x (bm, d)
        bm = xs[0].shape[0]

        # One fused projection over the (implicitly concatenated) features.
        # Fused lane layout: [ MLP hidden (H) | attn logits (N) | gate logits (N) ].
        acc = jnp.zeros((bm, H + 2 * N), jnp.float32)
        for n in range(N):
            acc = acc + jnp.dot(
                xs[n].astype(jnp.bfloat16),
                wf_ref[n * d:(n + 1) * d, :],                 # (d, H+2N) bf16
                preferred_element_type=jnp.float32,
            )
        fused = acc + bf_ref[...]                             # (bm, H+2N) f32

        hidden = jnp.maximum(fused[:, 0:H], 0.0)              # (bm, H)
        a_logits = fused[:, H:H + N]                          # (bm, N)
        g_logits = fused[:, H + N:H + 2 * N]                  # (bm, N)

        # Softmax over the feature axis (EUP exp + approx reciprocal).
        a_logits = a_logits - jnp.max(a_logits, axis=-1, keepdims=True)
        a_exp = jnp.exp(a_logits)
        weights = a_exp * pl.reciprocal(
            jnp.sum(a_exp, axis=-1, keepdims=True), approx=True)

        # Sigmoid gates via tanh (EUP).
        gates = 0.5 * (jnp.tanh(0.5 * g_logits) + 1.0)
        wg = weights * gates                                  # (bm, N) f32

        # Weighted sum of the (never concatenated) features, in f32.
        agg = wg[:, 0:1] * xs[0].astype(jnp.float32)
        for n in range(1, N):
            agg = agg + wg[:, n:n + 1] * xs[n].astype(jnp.float32)

        # MLP layer 2 (bf16 MXU feed, f32 accumulate).
        mlp = jnp.dot(hidden.astype(jnp.bfloat16), w2_ref[...],
                      preferred_element_type=jnp.float32) + b2_ref[...]

        o_ref[...] = (agg + mlp).astype(o_ref.dtype)

    return kernel


def _pick_bm(m):
    """Row-block size: sublane-full; large blocks for big M, >=2 grid steps
    for small M so v7x can shard the 'parallel' axis over both TensorCores."""
    if m >= 1024:
        return 512            # ~3 MiB VMEM footprint; sweep 256/512/1024 if tuning
    half = (m + 1) // 2
    return max(8, ((half + 7) // 8) * 8)


def enhanced_feature_interaction_aggregator(features_list, params):
    """Pallas forward pass. features_list: list of (..., d) arrays -> (..., H)."""
    N = len(features_list)
    lead_shape = features_list[0].shape[:-1]
    d = features_list[0].shape[-1]
    F = params["w1"].shape[0]
    H = params["w1"].shape[1]
    assert F == N * d
    # PyTorch's `aggregated + interacted` broadcast requires per-feature dim == output dim.
    assert d == H, "output_feat_dim must equal the per-feature dim"

    out_dtype = features_list[0].dtype
    feats = [f.reshape(-1, d) for f in features_list]         # views, no copy
    M = feats[0].shape[0]

    bm = _pick_bm(M)
    grid = (pl.cdiv(M, bm),)

    # Fused projection weight, ordered [W1 | Wa | Wg] so the H-wide MLP slice
    # is lane-aligned at 0 (and fills v5e's first 128-wide MXU output tile).
    w_fused = jnp.concatenate(
        [params["w1"], params["wa"], params["wg"]], axis=1).astype(jnp.bfloat16)
    b_fused = jnp.concatenate(
        [params["b1"], params["ba"], params["bg"]]).reshape(1, -1).astype(jnp.float32)
    w2 = params["w2"].astype(jnp.bfloat16)
    b2 = params["b2"].reshape(1, H).astype(jnp.float32)

    def const(shape):
        return pl.BlockSpec(shape, lambda i: (0, 0))

    feat_spec = pl.BlockSpec((bm, d), lambda i: (i, 0))

    out = pl.pallas_call(
        _make_kernel(N, d, H),
        grid=grid,
        in_specs=[feat_spec] * N + [
            const((F, H + 2 * N)), const((1, H + 2 * N)),     # fused W, b
            const((H, H)), const((1, H)),                     # mlp layer-2 W, b
        ],
        out_specs=pl.BlockSpec((bm, H), lambda i: (i, 0)),
        out_shape=jax.ShapeDtypeStruct((M, H), out_dtype),
        compiler_params=pltpu.CompilerParams(
            dimension_semantics=("parallel",)),
    )(*feats, w_fused, b_fused, w2, b2)

    return out.reshape(*lead_shape, H)


def _reference(features_list, params):
    x = jnp.concatenate(features_list, axis=-1)
    weights = jax.nn.softmax(x @ params["wa"] + params["ba"], axis=-1)[..., None]
    gates = jax.nn.sigmoid(x @ params["wg"] + params["bg"])[..., None]
    stacked = jnp.stack(features_list, axis=-2)                # torch.stack(dim=2)
    agg = jnp.sum(weights * gates * stacked, axis=-2)
    h = jnp.maximum(x @ params["w1"] + params["b1"], 0.0)
    mlp = h @ params["w2"] + params["b2"]
    return agg + mlp


if __name__ == "__main__":
    key = jax.random.PRNGKey(0)
    B, S = 2, 8
    num_features = 4
    feat_dim = 128                                  # per-feature dim (lane-dense)
    input_feat_dim = num_features * feat_dim        # 512
    output_feat_dim = feat_dim                      # must equal per-feature dim

    keys = jax.random.split(key, 12)
    features_list = [
        jax.random.normal(keys[i], (B, S, feat_dim), dtype=jnp.float32)
        for i in range(num_features)
    ]

    def linear_init(kw, kb, fan_in, fan_out):
        bound = 1.0 / (fan_in ** 0.5)
        w = jax.random.uniform(kw, (fan_in, fan_out), jnp.float32, -bound, bound)
        b = jax.random.uniform(kb, (fan_out,), jnp.float32, -bound, bound)
        return w, b

    wa, ba = linear_init(keys[4], keys[5], input_feat_dim, num_features)
    wg, bg = linear_init(keys[6], keys[7], input_feat_dim, num_features)
    w1, b1 = linear_init(keys[8], keys[9], input_feat_dim, output_feat_dim)
    w2, b2 = linear_init(keys[10], keys[11], output_feat_dim, output_feat_dim)
    params = dict(wa=wa, ba=ba, wg=wg, bg=bg, w1=w1, b1=b1, w2=w2, b2=b2)

    out = enhanced_feature_interaction_aggregator(features_list, params)
    out = jax.block_until_ready(out)

    ref = _reference(features_list, params)
    assert out.shape == (B, S, output_feat_dim), out.shape
    assert out.dtype == jnp.float32
    err = float(jnp.max(jnp.abs(out - ref)))
    # bf16 MXU operands (f32 accumulation) vs the pure-f32 reference: expect
    # ~1e-2 absolute error, so the tolerance is relaxed from the old 1e-4.
    assert jnp.allclose(out, ref, atol=5e-2, rtol=5e-2), f"max abs err {err}"
    print("KERNEL_OK")
</pallas_src>

<mosaic_0001>
module attributes {stable_mosaic.version = 11 : i64} {
  func.func @kernel(%arg0: i32, %arg1: memref<8x128xf32, #tpu.memory_space<vmem>>, %arg2: memref<8x128xf32, #tpu.memory_space<vmem>>, %arg3: memref<8x128xf32, #tpu.memory_space<vmem>>, %arg4: memref<8x128xf32, #tpu.memory_space<vmem>>, %arg5: memref<512x136xbf16, #tpu.memory_space<vmem>>, %arg6: memref<1x136xf32, #tpu.memory_space<vmem>>, %arg7: memref<128x128xbf16, #tpu.memory_space<vmem>>, %arg8: memref<1x128xf32, #tpu.memory_space<vmem>>, %arg9: memref<8x128xf32, #tpu.memory_space<vmem>>) attributes {dimension_semantics = [#tpu.dimension_semantics<parallel>], iteration_bounds = array<i64: 2>, scalar_prefetch = 0 : i64, scratch_operands = 0 : i64, tpu.core_type = #tpu.core_type<tc>, window_params = [{transform_indices = @transform_0, window_bounds = array<i64: 8, 128>}, {transform_indices = @transform_1, window_bounds = array<i64: 8, 128>}, {transform_indices = @transform_2, window_bounds = array<i64: 8, 128>}, {transform_indices = @transform_3, window_bounds = array<i64: 8, 128>}, {pipeline_mode = #tpu.pipeline_mode<synchronous>, transform_indices = @transform_4, window_bounds = array<i64: 512, 136>}, {pipeline_mode = #tpu.pipeline_mode<synchronous>, transform_indices = @transform_5, window_bounds = array<i64: 1, 136>}, {pipeline_mode = #tpu.pipeline_mode<synchronous>, transform_indices = @transform_6, window_bounds = array<i64: 128, 128>}, {pipeline_mode = #tpu.pipeline_mode<synchronous>, transform_indices = @transform_7, window_bounds = array<i64: 1, 128>}, {transform_indices = @transform_8, window_bounds = array<i64: 8, 128>}]} {
    %c0 = arith.constant 0 : index
    %c0_0 = arith.constant 0 : index
    %0 = vector.load %arg1[%c0, %c0_0] : memref<8x128xf32, #tpu.memory_space<vmem>>, vector<8x128xf32>
    %c0_1 = arith.constant 0 : index
    %c0_2 = arith.constant 0 : index
    %1 = vector.load %arg2[%c0_1, %c0_2] : memref<8x128xf32, #tpu.memory_space<vmem>>, vector<8x128xf32>
    %c0_3 = arith.constant 0 : index
    %c0_4 = arith.constant 0 : index
    %2 = vector.load %arg3[%c0_3, %c0_4] : memref<8x128xf32, #tpu.memory_space<vmem>>, vector<8x128xf32>
    %c0_5 = arith.constant 0 : index
    %c0_6 = arith.constant 0 : index
    %3 = vector.load %arg4[%c0_5, %c0_6] : memref<8x128xf32, #tpu.memory_space<vmem>>, vector<8x128xf32>
    %cst = arith.constant 0.000000e+00 : f32
    %4 = vector.broadcast %cst : f32 to vector<8x136xf32>
    %5 = arith.truncf %0 : vector<8x128xf32> to vector<8x128xbf16>
    %c0_7 = arith.constant 0 : index
    %c0_8 = arith.constant 0 : index
    %6 = vector.load %arg5[%c0_7, %c0_8] : memref<512x136xbf16, #tpu.memory_space<vmem>>, vector<128x136xbf16>
    %cst_9 = arith.constant dense<0.000000e+00> : vector<8x136xf32>
    %7 = tpu.matmul %5, %6, %cst_9 {dimension_numbers = #tpu.dot_dimension_numbers<[1], [0], [0], [1], [0, 0, 1, 1], [], []>} : vector<8x128xbf16>, vector<128x136xbf16>, vector<8x136xf32> -> vector<8x136xf32>
    %8 = arith.addf %4, %7 : vector<8x136xf32>
    %9 = arith.truncf %1 : vector<8x128xf32> to vector<8x128xbf16>
    %c128 = arith.constant 128 : index
    %c0_10 = arith.constant 0 : index
    %10 = vector.load %arg5[%c128, %c0_10] : memref<512x136xbf16, #tpu.memory_space<vmem>>, vector<128x136xbf16>
    %cst_11 = arith.constant dense<0.000000e+00> : vector<8x136xf32>
    %11 = tpu.matmul %9, %10, %cst_11 {dimension_numbers = #tpu.dot_dimension_numbers<[1], [0], [0], [1], [0, 0, 1, 1], [], []>} : vector<8x128xbf16>, vector<128x136xbf16>, vector<8x136xf32> -> vector<8x136xf32>
    %12 = arith.addf %8, %11 : vector<8x136xf32>
    %13 = arith.truncf %2 : vector<8x128xf32> to vector<8x128xbf16>
    %c256 = arith.constant 256 : index
    %c0_12 = arith.constant 0 : index
    %14 = vector.load %arg5[%c256, %c0_12] : memref<512x136xbf16, #tpu.memory_space<vmem>>, vector<128x136xbf16>
    %cst_13 = arith.constant dense<0.000000e+00> : vector<8x136xf32>
    %15 = tpu.matmul %13, %14, %cst_13 {dimension_numbers = #tpu.dot_dimension_numbers<[1], [0], [0], [1], [0, 0, 1, 1], [], []>} : vector<8x128xbf16>, vector<128x136xbf16>, vector<8x136xf32> -> vector<8x136xf32>
    %16 = arith.addf %12, %15 : vector<8x136xf32>
    %17 = arith.truncf %3 : vector<8x128xf32> to vector<8x128xbf16>
    %c384 = arith.constant 384 : index
    %c0_14 = arith.constant 0 : index
    %18 = vector.load %arg5[%c384, %c0_14] : memref<512x136xbf16, #tpu.memory_space<vmem>>, vector<128x136xbf16>
    %cst_15 = arith.constant dense<0.000000e+00> : vector<8x136xf32>
    %19 = tpu.matmul %17, %18, %cst_15 {dimension_numbers = #tpu.dot_dimension_numbers<[1], [0], [0], [1], [0, 0, 1, 1], [], []>} : vector<8x128xbf16>, vector<128x136xbf16>, vector<8x136xf32> -> vector<8x136xf32>
    %20 = arith.addf %16, %19 : vector<8x136xf32>
    %c0_16 = arith.constant 0 : index
    %c0_17 = arith.constant 0 : index
    %21 = vector.load %arg6[%c0_16, %c0_17] : memref<1x136xf32, #tpu.memory_space<vmem>>, vector<1x136xf32>
    %22 = vector.broadcast %21 : vector<1x136xf32> to vector<8x136xf32>
    %23 = arith.addf %20, %22 : vector<8x136xf32>
    %24 = vector.extract_strided_slice %23 {offsets = [0, 0], sizes = [8, 128], strides = [1, 1]} : vector<8x136xf32> to vector<8x128xf32>
    %cst_18 = arith.constant 0.000000e+00 : f32
    %25 = vector.broadcast %cst_18 : f32 to vector<8x128xf32>
    %26 = arith.maximumf %24, %25 : vector<8x128xf32>
    %27 = vector.extract_strided_slice %23 {offsets = [0, 128], sizes = [8, 4], strides = [1, 1]} : vector<8x136xf32> to vector<8x4xf32>
    %28 = vector.extract_strided_slice %23 {offsets = [0, 132], sizes = [8, 4], strides = [1, 1]} : vector<8x136xf32> to vector<8x4xf32>
    %cst_19 = arith.constant dense<0xFF800000> : vector<8xf32>
    %29 = vector.multi_reduction <maximumf>, %27, %cst_19 [1] : vector<8x4xf32> to vector<8xf32>
    %30 = vector.shape_cast %29 : vector<8xf32> to vector<8x1xf32>
    %31 = vector.broadcast %30 : vector<8x1xf32> to vector<8x4xf32>
    %32 = arith.subf %27, %31 : vector<8x4xf32>
    %33 = math.exp %32 : vector<8x4xf32>
    %cst_20 = arith.constant dense<0.000000e+00> : vector<8xf32>
    %34 = vector.multi_reduction <add>, %33, %cst_20 [1] : vector<8x4xf32> to vector<8xf32>
    %35 = vector.shape_cast %34 : vector<8xf32> to vector<8x1xf32>
    %36 = tpu.reciprocal %35 {approx = true} : vector<8x1xf32> -> vector<8x1xf32>
    %37 = vector.broadcast %36 : vector<8x1xf32> to vector<8x4xf32>
    %38 = arith.mulf %33, %37 : vector<8x4xf32>
    %cst_21 = arith.constant 5.000000e-01 : f32
    %39 = vector.broadcast %cst_21 : f32 to vector<8x4xf32>
    %40 = arith.mulf %39, %28 : vector<8x4xf32>
    %41 = math.tanh %40 : vector<8x4xf32>
    %cst_22 = arith.constant 1.000000e+00 : f32
    %42 = vector.broadcast %cst_22 : f32 to vector<8x4xf32>
    %43 = arith.addf %41, %42 : vector<8x4xf32>
    %cst_23 = arith.constant 5.000000e-01 : f32
    %44 = vector.broadcast %cst_23 : f32 to vector<8x4xf32>
    %45 = arith.mulf %44, %43 : vector<8x4xf32>
    %46 = arith.mulf %38, %45 : vector<8x4xf32>
    %47 = vector.extract_strided_slice %46 {offsets = [0, 0], sizes = [8, 1], strides = [1, 1]} : vector<8x4xf32> to vector<8x1xf32>
    %48 = vector.broadcast %47 : vector<8x1xf32> to vector<8x128xf32>
    %49 = arith.mulf %48, %0 : vector<8x128xf32>
    %50 = vector.extract_strided_slice %46 {offsets = [0, 1], sizes = [8, 1], strides = [1, 1]} : vector<8x4xf32> to vector<8x1xf32>
    %51 = vector.broadcast %50 : vector<8x1xf32> to vector<8x128xf32>
    %52 = arith.mulf %51, %1 : vector<8x128xf32>
    %53 = arith.addf %49, %52 : vector<8x128xf32>
    %54 = vector.extract_strided_slice %46 {offsets = [0, 2], sizes = [8, 1], strides = [1, 1]} : vector<8x4xf32> to vector<8x1xf32>
    %55 = vector.broadcast %54 : vector<8x1xf32> to vector<8x128xf32>
    %56 = arith.mulf %55, %2 : vector<8x128xf32>
    %57 = arith.addf %53, %56 : vector<8x128xf32>
    %58 = vector.extract_strided_slice %46 {offsets = [0, 3], sizes = [8, 1], strides = [1, 1]} : vector<8x4xf32> to vector<8x1xf32>
    %59 = vector.broadcast %58 : vector<8x1xf32> to vector<8x128xf32>
    %60 = arith.mulf %59, %3 : vector<8x128xf32>
    %61 = arith.addf %57, %60 : vector<8x128xf32>
    %62 = arith.truncf %26 : vector<8x128xf32> to vector<8x128xbf16>
    %c0_24 = arith.constant 0 : index
    %c0_25 = arith.constant 0 : index
    %63 = vector.load %arg7[%c0_24, %c0_25] : memref<128x128xbf16, #tpu.memory_space<vmem>>, vector<128x128xbf16>
    %cst_26 = arith.constant dense<0.000000e+00> : vector<8x128xf32>
    %64 = tpu.matmul %62, %63, %cst_26 {dimension_numbers = #tpu.dot_dimension_numbers<[1], [0], [0], [1], [0, 0, 1, 1], [], []>} : vector<8x128xbf16>, vector<128x128xbf16>, vector<8x128xf32> -> vector<8x128xf32>
    %c0_27 = arith.constant 0 : index
    %c0_28 = arith.constant 0 : index
    %65 = vector.load %arg8[%c0_27, %c0_28] : memref<1x128xf32, #tpu.memory_space<vmem>>, vector<1x128xf32>
    %66 = vector.broadcast %65 : vector<1x128xf32> to vector<8x128xf32>
    %67 = arith.addf %64, %66 : vector<8x128xf32>
    %68 = arith.addf %61, %67 : vector<8x128xf32>
    %c0_29 = arith.constant 0 : index
    %c0_30 = arith.constant 0 : index
    %69 = vector.load %arg9[%c0_29, %c0_30] : memref<8x128xf32, #tpu.memory_space<vmem>>, vector<8x128xf32>
    tpu.vector_store %arg9[%c0_29, %c0_30], %68 {strides = array<i32>} : memref<8x128xf32, #tpu.memory_space<vmem>>, vector<8x128xf32>,
    return
  }
  func.func @transform_0(%arg0: i32) -> (i32, i32) {
    %c0_i32 = arith.constant 0 : i32
    %c0_i32_0 = arith.constant 0 : i32
    return %arg0, %c0_i32 : i32, i32
  }
  func.func @transform_1(%arg0: i32) -> (i32, i32) {
    %c0_i32 = arith.constant 0 : i32
    %c0_i32_0 = arith.constant 0 : i32
    return %arg0, %c0_i32 : i32, i32
  }
  func.func @transform_2(%arg0: i32) -> (i32, i32) {
    %c0_i32 = arith.constant 0 : i32
    %c0_i32_0 = arith.constant 0 : i32
    return %arg0, %c0_i32 : i32, i32
  }
  func.func @transform_3(%arg0: i32) -> (i32, i32) {
    %c0_i32 = arith.constant 0 : i32
    %c0_i32_0 = arith.constant 0 : i32
    return %arg0, %c0_i32 : i32, i32
  }
  func.func @transform_4(%arg0: i32) -> (i32, i32) {
    %c0_i32 = arith.constant 0 : i32
    %c0_i32_0 = arith.constant 0 : i32
    %c0_i32_1 = arith.constant 0 : i32
    return %c0_i32, %c0_i32_0 : i32, i32
  }
  func.func @transform_5(%arg0: i32) -> (i32, i32) {
    %c0_i32 = arith.constant 0 : i32
    %c0_i32_0 = arith.constant 0 : i32
    %c0_i32_1 = arith.constant 0 : i32
    return %c0_i32, %c0_i32_0 : i32, i32
  }
  func.func @transform_6(%arg0: i32) -> (i32, i32) {
    %c0_i32 = arith.constant 0 : i32
    %c0_i32_0 = arith.constant 0 : i32
    %c0_i32_1 = arith.constant 0 : i32
    return %c0_i32, %c0_i32_0 : i32, i32
  }
  func.func @transform_7(%arg0: i32) -> (i32, i32) {
    %c0_i32 = arith.constant 0 : i32
    %c0_i32_0 = arith.constant 0 : i32
    %c0_i32_1 = arith.constant 0 : i32
    return %c0_i32, %c0_i32_0 : i32, i32
  }
  func.func @transform_8(%arg0: i32) -> (i32, i32) {
    %c0_i32 = arith.constant 0 : i32
    %c0_i32_0 = arith.constant 0 : i32
    return %arg0, %c0_i32 : i32, i32
  }
}

</mosaic_0001>

<bundles_post_ra>
// kernel: tpu_custom_call.1
= control target key start
LH: loop header
LB: loop body
LE: loop exit
PB: predicated region body
PF: predicated region fallthrough
CT: control target
= control target key end

     0   :  { %13 = vsyncpa [#allocation3], 0  ;;  %s1953_s0 = inlined_call_operand.vmem [shape: f32[16,128], index: 0, kind: input, shape index: {}]   ;;  %s1954_s1 = inlined_call_operand.vmem [shape: f32[16,128], index: 1, kind: input, shape index: {}]   ;;  %s1955_s2 = inlined_call_operand.vmem [shape: f32[16,128], index: 2, kind: input, shape index: {}]   ;;  %s1956_s3 = inlined_call_operand.vmem [shape: f32[16,128], index: 3, kind: input, shape index: {}]   ;;  %s1957_s4 = inlined_call_operand.vmem [shape: bf16[512,136], index: 4, kind: input, shape index: {}]   ;;  %s1958_s5 = inlined_call_operand.vmem [shape: f32[1,136], index: 5, kind: input, shape index: {}]   ;;  %s1959_s6 = inlined_call_operand.vmem [shape: bf16[128,128], index: 6, kind: input, shape index: {}]   ;;  %s1960_s7 = inlined_call_operand.vmem [shape: f32[1,128], index: 7, kind: input, shape index: {}]   ;;  %s1961_s8 = inlined_call_operand.hbm [shape: f32[16,128], index: 8, kind: output, shape index: {}]  }
   0x1   :  { %15 = vsyncpa [#allocation3 + $0x1], 0  ;;  %s1589_s27 = smov 0   ;;  %s1591_s28 = smov 0  }
   0x2   :  { %s1593_s29 = smov 0   ;;  %s1595_s30 = smov 0  }
   0x3 LB: > { %1963 = sst [smem:[#allocation5_spill]] %s1530_s29  ;;  %s1610_s9 = sadd.s32 4294967295, %s1534_s30   ;;  %s1534_s30 = sphi %s1595_s30, %s1971_s30   ;;  %s1530_s29 = sphi %s1593_s29, %s1968_s29   ;;  %s1526_s28 = sphi %s1591_s28, %s1970_s28   ;;  %s1522_s27 = sphi %s1589_s27, %s1969_s27  }
   0x4   : > { %s1196_s10 = sadd.s32 4294967294, %s1534_s30   ;;  %s1614_s11 = sadd.s32 1, %s1534_s30  }
   0x5   : > { %s216_s12 = sadd.s32 1, %s1530_s29  ;;  %s213_s13 = ssub.s32 %s1534_s30, %s1614_s11 }
   0x6   : > { %p226_p0 = scmp.ne.s32.totalorder %s1530_s29, %s1526_s28  ;;  %p214_p1 = scmp.eq.s32.totalorder %s213_s13, 0 }
   0x7   : > { %p227_p2 = scmp.eq.s32.totalorder %s1610_s9, 1  ;;  %p232_p3 = scmp.ne.s32.totalorder %s1526_s28, %s1522_s27 }
   0x8   : > { %p233_p4 = scmp.eq.s32.totalorder %s1196_s10, 1  ;;  %p1199_p7 = scmp.ge.s32.totalorder %s1534_s30, 1 }
   0x9   : > { %s1625_s14 = scalar_select %p214_p1, %s1530_s29, %s216_s12  }
   0xa   : > { %p1627_p5 = por %p227_p2, %p226_p0  ;;  %p1631_p6 = por %p233_p4, %p232_p3 }
   0xb   : > { %1964 = sst [smem:[#allocation6_spill]] %s1625_s14  ;;  %p291_p8 = scmp.lt.s32.totalorder %s1534_s30, 3 }
   0xd   : > { %p292_p9 = pnand %p1199_p7, %p291_p8 }
   0xe   : > { %v1362_v0 = vld [vmem:[%s1957_s4 + $0x84] ss:$8 sps:$4 sm:$0xff] (!%p292_p9)   ;;  %v1536_v2 = vmov (!%p292_p9), 0   ;;  %v1366_v3 = vld [vmem:[%s1957_s4 + $0x80] ss:$8 sps:$4 sm:$0xff] (!%p292_p9)   ;;  %p336_p10 = scmp.lt.s32.totalorder (!%p292_p9), %s1610_s9, 1 }
   0xf   : > { %295 = sbr.rel (%p292_p9) target bundleno = 773 (0x305), region = 52  ;;  %v1364_v1 = vld [vmem:[%s1957_s4 + $0x4] ss:$8 sps:$4 sm:$0xff] (!%p292_p9)   ;;  %503 = vmatprep.mubr.bf16.mxu0 (!%p292_p9), %v1536_v2  ;;  %624 = vmatprep.mubr.bf16.mxu1 (!%p292_p9), %v1536_v2  ;;  %v1367_v4 = vld [vmem:[%s1957_s4] ss:$8 sps:$4 sm:$0xff] (!%p292_p9)   ;;  %vm1538_vm0 = vmmov (!%p292_p9), 0  }
  0x10   : > { %471 = vmatprep.subr.bf16.mxu0 (!%p292_p9), %v1362_v0  ;;  %1357 = vset.pattern.permute.xlu1 (!%p292_p9), %v1536_v2  ;;  %v1368_v5 = vld [vmem:[%s1957_s4 + $0x94] ss:$8 sps:$4 sm:$0xff] (!%p292_p9)   ;;  %v1372_v7 = vld [vmem:[%s1957_s4 + $0x90] ss:$8 sps:$4 sm:$0xff] (!%p292_p9)   ;;  %v1374_v9 = vld [vmem:[%s1957_s4 + $0xa4] ss:$8 sps:$4 sm:$0xff] (!%p292_p9)  }
  0x11   : > { %592 = vmatprep.subr.bf16.mxu1 (!%p292_p9), %v1364_v1  ;;  %472 = vmatpush1.bf16.msra.mxu0 (!%p292_p9), %v1366_v3  ;;  %v1370_v6 = vld [vmem:[%s1957_s4 + $0x14] ss:$8 sps:$4 sm:$0xff] (!%p292_p9)   ;;  %v1373_v8 = vld [vmem:[%s1957_s4 + $0x10] ss:$8 sps:$4 sm:$0xff] (!%p292_p9)   ;;  %v1376_v10 = vld [vmem:[%s1957_s4 + $0x24] ss:$8 sps:$4 sm:$0xff] (!%p292_p9)  }
  0x12   : > { %593 = vmatpush1.bf16.msra.mxu1 (!%p292_p9), %v1367_v4  ;;  %473 = vmatprep.subr.bf16.mxu0 (!%p292_p9), %v1368_v5  ;;  %v1378_v11 = vld [vmem:[%s1957_s4 + $0xa0] ss:$8 sps:$4 sm:$0xff] (!%p292_p9)   ;;  %v1380_v13 = vld [vmem:[%s1957_s4 + $0xb4] ss:$8 sps:$4 sm:$0xff] (!%p292_p9)   ;;  %v1384_v15 = vld [vmem:[%s1957_s4 + $0xb0] ss:$8 sps:$4 sm:$0xff] (!%p292_p9)  }
  0x13   : > { %594 = vmatprep.subr.bf16.mxu1 (!%p292_p9), %v1370_v6  ;;  %v1379_v12 = vld [vmem:[%s1957_s4 + $0x20] ss:$8 sps:$4 sm:$0xff] (!%p292_p9)   ;;  %v1382_v14 = vld [vmem:[%s1957_s4 + $0x34] ss:$8 sps:$4 sm:$0xff] (!%p292_p9)   ;;  %v1385_v16 = vld [vmem:[%s1957_s4 + $0x30] ss:$8 sps:$4 sm:$0xff] (!%p292_p9)  }
  0x14   : > { %v1386_v17 = vld [vmem:[%s1957_s4 + $0xc4] ss:$8 sps:$4 sm:$0xff] (!%p292_p9)   ;;  %v1390_v19 = vld [vmem:[%s1957_s4 + $0xc0] ss:$8 sps:$4 sm:$0xff] (!%p292_p9)   ;;  %v1392_v21 = vld [vmem:[%s1957_s4 + $0xd4] ss:$8 sps:$4 sm:$0xff] (!%p292_p9)  }
  0x15   : > { %474 = vmatpush1.bf16.msra.mxu0 (!%p292_p9), %v1372_v7  ;;  %v1388_v18 = vld [vmem:[%s1957_s4 + $0x44] ss:$8 sps:$4 sm:$0xff] (!%p292_p9)   ;;  %v1391_v20 = vld [vmem:[%s1957_s4 + $0x40] ss:$8 sps:$4 sm:$0xff] (!%p292_p9)   ;;  %v1394_v22 = vld [vmem:[%s1957_s4 + $0x54] ss:$8 sps:$4 sm:$0xff] (!%p292_p9)  }
  0x16   : > { %595 = vmatpush1.bf16.msra.mxu1 %v1373_v8  ;;  %475 = vmatprep.subr.bf16.mxu0 %v1374_v9  ;;  %s337_s22 = scalar_select %p336_p10, %s1610_s9, 1  ;;  %v1396_v23 = vld [vmem:[%s1957_s4 + $0xd0] ss:$8 sps:$4 sm:$0xff]   ;;  %v1398_v25 = vld [vmem:[%s1957_s4 + $0xe4] ss:$8 sps:$4 sm:$0xff]   ;;  %vm928_vm1 = vcmask 31744  }
  0x17   : > { %596 = vmatprep.subr.bf16.mxu1 %v1376_v10  ;;  %v1397_v24 = vld [vmem:[%s1957_s4 + $0x50] ss:$8 sps:$4 sm:$0xff]   ;;  %v1400_v26 = vld [vmem:[%s1957_s4 + $0x64] ss:$8 sps:$4 sm:$0xff]   ;;  %v1402_v27 = vld [vmem:[%s1957_s4 + $0xe0] ss:$8 sps:$4 sm:$0xff]  }
  0x18   : > { %s1720_s18 = sshll.u32 %s337_s22, 3  ;;  %v1403_v28 = vld [vmem:[%s1957_s4 + $0x60] ss:$8 sps:$4 sm:$0xff]   ;;  %v1404_v29 = vld [vmem:[%s1957_s4 + $0xf4] ss:$8 sps:$4 sm:$0xff]   ;;  %v1537_v10 = vmov 0.0  }
  0x19   : > { %476 = vmatpush1.bf16.msra.mxu0 %v1378_v11  ;;  %v1406_v30 = vld [vmem:[%s1957_s4 + $0x74] ss:$8 sps:$4 sm:$0xff]   ;;  %s343_s13 = scalar_lea.vmem %s1954_s1, %s1720_s18  ;;  %s339_s20 = scalar_lea.vmem %s1953_s0, %s1720_s18  ;;  %v1408_v31 = vld [vmem:[%s1957_s4 + $0xf0] ss:$8 sps:$4 sm:$0xff]   ;;  %v1412_v35 = vld [vmem:[%s1957_s4 + $0x104] ss:$8 sps:$4 sm:$0xff]  }
  0x1a   : > { %597 = vmatpush1.bf16.msra.mxu1 %v1379_v12  ;;  %477 = vmatprep.subr.bf16.mxu0 %v1380_v13  ;;  %v1409_v32 = vld [vmem:[%s1957_s4 + $0x70] ss:$8 sps:$4 sm:$0xff]   ;;  %v1748_v33 = vld [vmem:[%s343_s13] sm:$0xff]  ;;  %v1418_v41 = vld [vmem:[%s1957_s4 + $0x114] ss:$8 sps:$4 sm:$0xff]   ;;  %s347_s10 = scalar_lea.vmem %s1955_s2, %s1720_s18  ;;  %s351_s17 = scalar_lea.vmem %s1956_s3, %s1720_s18 }
  0x1b   : > { %598 = vmatprep.subr.bf16.mxu1 %v1382_v14  ;;  %v1750_v34 = vld [vmem:[%s339_s20] sm:$0xff]  ;;  %v374_v37 = vpack.c.bf16 %v1748_v33, %v1748_v33  ;;  %v1421_v42 = vld [vmem:[%s1957_s4 + $0x194] ss:$8 sps:$4 sm:$0xff]   ;;  %v1416_v43 = vld [vmem:[%s1957_s4 + $0x110] ss:$8 sps:$4 sm:$0xff]   ;;  %s1539_s22 = smov 124  }
  0x1c   : > { %v1415_v36 = vld [vmem:[%s1957_s4 + $0x184] ss:$8 sps:$4 sm:$0xff]   ;;  %v357_v38 = vpack.c.bf16 %v1750_v34, %v1750_v34  ;;  %v1410_v39 = vld [vmem:[%s1957_s4 + $0x100] ss:$8 sps:$4 sm:$0xff]   ;;  %v1419_v44 = vld [vmem:[%s1957_s4 + $0x190] ss:$8 sps:$4 sm:$0xff]  }
  0x1d   : > { %478 = vmatpush1.bf16.msra.mxu0 %v1384_v15  ;;  %v1413_v40 = vld [vmem:[%s1957_s4 + $0x180] ss:$8 sps:$4 sm:$0xff]   ;;  %v1424_v45 = vld [vmem:[%s1957_s4 + $0x124] ss:$8 sps:$4 sm:$0xff]   ;;  %v1430_v49 = vld [vmem:[%s1957_s4 + $0x134] ss:$8 sps:$4 sm:$0xff]  }
  0x1e   : > { %599 = vmatpush1.bf16.msra.mxu1 %v1385_v16  ;;  %479 = vmatprep.subr.bf16.mxu0 %v1386_v17  ;;  %v1427_v46 = vld [vmem:[%s1957_s4 + $0x1a4] ss:$8 sps:$4 sm:$0xff]   ;;  %v1422_v47 = vld [vmem:[%s1957_s4 + $0x120] ss:$8 sps:$4 sm:$0xff]   ;;  %v1433_v50 = vld [vmem:[%s1957_s4 + $0x1b4] ss:$8 sps:$4 sm:$0xff]  }
  0x1f   : > { %600 = vmatprep.subr.bf16.mxu1 %v1388_v18  ;;  %v1425_v48 = vld [vmem:[%s1957_s4 + $0x1a0] ss:$8 sps:$4 sm:$0xff]   ;;  %v1428_v51 = vld [vmem:[%s1957_s4 + $0x130] ss:$8 sps:$4 sm:$0xff]   ;;  %v1436_v53 = vld [vmem:[%s1957_s4 + $0x144] ss:$8 sps:$4 sm:$0xff]  }
  0x20   : > { %v1431_v52 = vld [vmem:[%s1957_s4 + $0x1b0] ss:$8 sps:$4 sm:$0xff]   ;;  %v1439_v54 = vld [vmem:[%s1957_s4 + $0x1c4] ss:$8 sps:$4 sm:$0xff]   ;;  %v1434_v55 = vld [vmem:[%s1957_s4 + $0x140] ss:$8 sps:$4 sm:$0xff]  }
  0x21   : > { %480 = vmatpush1.bf16.msra.mxu0 %v1390_v19  ;;  %v1437_v56 = vld [vmem:[%s1957_s4 + $0x1c0] ss:$8 sps:$4 sm:$0xff]   ;;  %v1442_v57 = vld [vmem:[%s1957_s4 + $0x154] ss:$8 sps:$4 sm:$0xff]   ;;  %v1440_v59 = vld [vmem:[%s1957_s4 + $0x150] ss:$8 sps:$4 sm:$0xff]  }
  0x22   : > { %601 = vmatpush1.bf16.msra.mxu1 %v1391_v20  ;;  %481 = vmatprep.subr.bf16.mxu0 %v1392_v21  ;;  %v1445_v58 = vld [vmem:[%s1957_s4 + $0x1d4] ss:$8 sps:$4 sm:$0xff]   ;;  %v1443_v60 = vld [vmem:[%s1957_s4 + $0x1d0] ss:$8 sps:$4 sm:$0xff]   ;;  %v1448_v61 = vld [vmem:[%s1957_s4 + $0x164] ss:$8 sps:$4 sm:$0xff]  }
  0x23   : > { %602 = vmatprep.subr.bf16.mxu1 %v1394_v22  ;;  %v1451_v62 = vld [vmem:[%s1957_s4 + $0x1e4] ss:$8 sps:$4 sm:$0xff]   ;;  %v1446_v63 = vld [vmem:[%s1957_s4 + $0x160] ss:$8 sps:$4 sm:$0xff]   ;;  %v1454_v1 = vld [vmem:[%s1957_s4 + $0x174] ss:$8 sps:$4 sm:$0xff]  }
  0x24   : > { %v1449_v0 = vld [vmem:[%s1957_s4 + $0x1e0] ss:$8 sps:$4 sm:$0xff]   ;;  %v1452_v3 = vld [vmem:[%s1957_s4 + $0x170] ss:$8 sps:$4 sm:$0xff]   ;;  %s333_s26 = sand.u32 1, %s1526_s28   ;;  %s1279_s12 = sshll.u32 %s1610_s9, 7 }
  0x25   : > { %482 = vmatpush1.bf16.msra.mxu0 %v1396_v23  ;;  %v1455_v4 = vld [vmem:[%s1957_s4 + $0x1f0] ss:$8 sps:$4 sm:$0xff]   ;;  %v1862_v5 = vld [vmem:[%s347_s10] sm:$0xff]  ;;  %v1459_v11 = vld [vmem:[%s1959_s6 + $0x8] sm:$0xff]   ;;  %s1200_s29 = sshll.u32 %s333_s26, 3  ;;  %s1911_s21 = scalar_lea.hbm %s1961_s8, %s1279_s12 }
  0x26   : > { %603 = vmatpush1.bf16.msra.mxu1 %v1397_v24  ;;  %483 = vmatprep.subr.bf16.mxu0 %v1398_v25  ;;  %v1864_v6 = vld [vmem:[%s351_s17] sm:$0xff]  ;;  %v633_v7 = vpack.c.bf16 %v1862_v5, %v1862_v5  ;;  %v1460_v12 = vld [vmem:[%s1959_s6 + $0x10] sm:$0xff]   ;;  %v1461_v13 = vld [vmem:[%s1959_s6 + $0x18] sm:$0xff]   ;;  %s335_s13 = scalar_lea.vmem [#allocation2], %s1200_s29  ;;  %s1088_s23 = scalar_lea.sflag [#allocation3], %s333_s26 }
  0x27   : > { %604 = vmatprep.subr.bf16.mxu1 %v1400_v26  ;;  %v773_v8 = vpack.c.bf16 %v1864_v6, %v1864_v6  ;;  %v1458_v9 = vld [vmem:[%s1959_s6] sm:$0xff]   ;;  %v1463_v15 = vld [vmem:[%s1959_s6 + $0x28] sm:$0xff]   ;;  %v1464_v16 = vld [vmem:[%s1959_s6 + $0x30] sm:$0xff]   ;;  %s1101_s17 = sshll.u32 %s335_s13, 4  ;;  %s1543_s9 = smov [#allocation2]   ;;  %s1913_s17 = int_to_ptr.vmem [resolvable:$true] %s1101_s17 }
  0x28   : > { %v1462_v14 = vld [vmem:[%s1959_s6 + $0x20] sm:$0xff]   ;;  %v1465_v17 = vld [vmem:[%s1959_s6 + $0x38] sm:$0xff]   ;;  %s1472_s18 = scalar_lea.vmem %s1913_s17, 128  ;;  %s1476_s24 = sshll.u32 %s1543_s9, 4  ;;  %s1477_s24 = int_to_ptr.vmem [resolvable:$false] %s1476_s24 }
  0x29   : > { %484 = vmatpush1.bf16.msra.mxu0 %v1402_v27  ;;  %p1473_p11 = scmp.ne.s32.totalorder %s1913_s17, %s1472_s18  ;;  %s1478_s25 = scalar_lea.vmem %s1477_s24, 256 }
  0x2a   : > { %605 = vmatpush1.bf16.msra.mxu1 %v1403_v28  ;;  %485 = vmatprep.subr.bf16.mxu0 %v1404_v29  ;;  %v915_v28 = vlaneseq  ;;  %p1479_p0 = scmp.lt.s32.totalorder %s1913_s17, %s1477_s24  ;;  %p1480_p1 = scmp.lt.s32.totalorder %s1478_s25, %s1472_s18 }
  0x2b   : > { %606 = vmatprep.subr.bf16.mxu1 %v1406_v30  ;;  %p1474_p12 = pnand %p1473_p11, %p1627_p5 }
  0x2c   : > { %v916_v29 = vshrl.u32 %v915_v28, 7  ;;  %p1481_p2 = por %p1480_p1, %p1479_p0 }
  0x2d   : > { %486 = vmatpush1.bf16.msra.mxu0 %v1408_v31  ;;  %v913_v31 = vld [vmem:[%s1958_s5] sm:$0x3]  ;;  %p1475_p13 = pneg %p1474_p12 }
  0x2e   : > { %607 = vmatpush1.bf16.msra.mxu1 %v1409_v32  ;;  %730 = vmatprep.subr.bf16.mxu0 %v1412_v35  ;;  %v917_v30 = vsub.s32 0, %v916_v29  ;;  %v921_v32 = vsub.s32 1, %v916_v29 }
  0x2f   : > { %870 = vmatprep.subr.bf16.mxu1 %v1415_v36  ;;  %p1482_p3 = pnand %p1481_p2, %p1475_p13 }
  0x30   : > { %504 = vmatmul.mubr.bf16.vlgmr.msra.gmra.mrb[0].mxu0 %v374_v37 }
  0x31   : > { %625 = vmatmul.mubr.bf16.vlgmr.msra.gmra.mrb[0].mxu1 %v357_v38  ;;  %731 = vmatpush1.bf16.msra.mxu0 %v1410_v39  ;;  %v918_v38 = vrot.slane %v913_v31, %v917_v30 }
  0x32   : > { %871 = vmatpush1.bf16.msra.mxu1 %v1413_v40  ;;  %732 = vmatprep.subr.bf16.mxu0 %v1418_v41 }
  0x33   : > { %872 = vmatprep.subr.bf16.mxu1 %v1421_v42  ;;  %762 = vmatprep.mubr.bf16.mxu0 %v1536_v2  ;;  %v922_v42 = vrot.slane %v913_v31, %v921_v32 }
  0x34   : > { %902 = vmatprep.mubr.bf16.mxu1 %v1536_v2  ;;  %v1457_v2 = vld [vmem:[%s1957_s4 + $0x1f4] ss:$8 sps:$4 sm:$0xff]  }
  0x35   : > { %733 = vmatpush1.bf16.msra.mxu0 %v1416_v43 }
  0x36   : > { %873 = vmatpush1.bf16.msra.mxu1 %v1419_v44  ;;  %734 = vmatprep.subr.bf16.mxu0 %v1424_v45 }
  0x37   : > { %874 = vmatprep.subr.bf16.mxu1 %v1427_v46 }
  0x39   : > { %735 = vmatpush1.bf16.msra.mxu0 %v1422_v47 }
  0x3a   : > { %875 = vmatpush1.bf16.msra.mxu1 %v1425_v48  ;;  %736 = vmatprep.subr.bf16.mxu0 %v1430_v49 }
  0x3b   : > { %876 = vmatprep.subr.bf16.mxu1 %v1433_v50 }
  0x3d   : > { %737 = vmatpush1.bf16.msra.mxu0 %v1428_v51 }
  0x3e   : > { %877 = vmatpush1.bf16.msra.mxu1 %v1431_v52  ;;  %738 = vmatprep.subr.bf16.mxu0 %v1436_v53 }
  0x3f   : > { %878 = vmatprep.subr.bf16.mxu1 %v1439_v54 }
  0x41   : > { %739 = vmatpush1.bf16.msra.mxu0 %v1434_v55 }
  0x42   : > { %879 = vmatpush1.bf16.msra.mxu1 %v1437_v56  ;;  %740 = vmatprep.subr.bf16.mxu0 %v1442_v57 }
  0x43   : > { %880 = vmatprep.subr.bf16.mxu1 %v1445_v58 }
  0x45   : > { %741 = vmatpush1.bf16.msra.mxu0 %v1440_v59 }
  0x46   : > { %881 = vmatpush1.bf16.msra.mxu1 %v1443_v60  ;;  %742 = vmatprep.subr.bf16.mxu0 %v1448_v61 }
  0x47   : > { %882 = vmatprep.subr.bf16.mxu1 %v1451_v62 }
  0x49   : > { %743 = vmatpush1.bf16.msra.mxu0 %v1446_v63  ;;  %v1540_v63 = vmov 1  }
  0x4a   : > { %883 = vmatpush1.bf16.msra.mxu1 %v1449_v0  ;;  %744 = vmatprep.subr.bf16.mxu0 %v1454_v1 }
  0x4b   : > { %884 = vmatprep.subr.bf16.mxu1 %v1457_v2  ;;  %1358 = vset.pattern.permute.xlu0 %v1540_v63 }
  0x4d   : > { %745 = vmatpush1.bf16.msra.mxu0 %v1452_v3 }
  0x4e   : > { %885 = vmatpush1.bf16.msra.mxu1 %v1455_v4  ;;  %1291 = vmatprep.subr.bf16.mxu0 %v1537_v10 }
  0x50   : > { %763 = vmatmul.mubr.bf16.vlgmr.msra.gmra.mrb[4].mxu0 %v633_v7 }
  0x51   : > { %903 = vmatmul.mubr.bf16.vlgmr.msra.gmra.mrb[4].mxu1 %v773_v8  ;;  %1292 = vmatpush3.bf16.msra.mxu0 %v1458_v9 }
  0x52   : > { %1293 = vmatprep.subr.bf16.mxu0 %v1537_v10  ;;  %1307 = vmatprep.mubr.msk.bf16.mxu0 %vm1538_vm0, %v1537_v10 }
  0x55   : > { %1294 = vmatpush3.bf16.msra.mxu0 %v1459_v11  ;;  %v1541_v11 = vmov 2  }
  0x56   : > { %1295 = vmatprep.subr.bf16.mxu0 %v1537_v10 }
  0x59   : > { %1296 = vmatpush3.bf16.msra.mxu0 %v1460_v12  ;;  %v1542_v12 = vmov 3  }
  0x5a   : > { %1297 = vmatprep.subr.bf16.mxu0 %v1537_v10 }
  0x5d   : > { %1298 = vmatpush3.bf16.msra.mxu0 %v1461_v13 }
  0x5e   : > { %1299 = vmatprep.subr.bf16.mxu0 %v1537_v10 }
  0x61   : > { %1300 = vmatpush3.bf16.msra.mxu0 %v1462_v14 }
  0x62   : > { %1301 = vmatprep.subr.bf16.mxu0 %v1537_v10 }
  0x65   : > { %1302 = vmatpush3.bf16.msra.mxu0 %v1463_v15 }
  0x66   : > { %1303 = vmatprep.subr.bf16.mxu0 %v1537_v10 }
  0x69   : > { %1304 = vmatpush3.bf16.msra.mxu0 %v1464_v16 }
  0x6a   : > { %1305 = vmatprep.subr.bf16.mxu0 %v1537_v10 }
  0x6d   : > { %1306 = vmatpush3.bf16.msra.mxu0 %v1465_v17 }
 0x103   : > { %v505_v18 = vpop.f32.mrb[0].mxu0 }
 0x104   : > { %v626_v19 = vpop.f32.mrb[0].mxu1  ;;  %v507_v21 = vpop.f32.mrb[1].mxu0 }
 0x105   : > { %v627_v20 = vadd.f32 %v626_v19, %v505_v18  ;;  %v628_v22 = vpop.f32.mrb[1].mxu1  ;;  %v509_v24 = vpop.f32.mrb[2].mxu0 }
 0x106   : > { %v629_v23 = vadd.f32 %v628_v22, %v507_v21  ;;  %v630_v25 = vpop.f32.mrb[2].mxu1  ;;  %v510_v26 = vpop.f32.mrb[3].mxu0 }
 0x107   : > { %v631_v27 = vpop.f32.mrb[3].mxu1 }
 0x123   : > { %v764_v35 = vpop.f32.mrb[4].mxu0 }
 0x124   : > { %v904_v36 = vpop.f32.mrb[4].mxu1  ;;  %v771_v37 = vadd.f32 %v764_v35, %v627_v20  ;;  %v766_v39 = vpop.f32.mrb[5].mxu0  ;;  %v1269_v20 = vld [vmem:[%s1960_s7] ss:$0 sm:$0xff] }
 0x125   : > { %v906_v40 = vpop.f32.mrb[5].mxu1  ;;  %v772_v41 = vadd.f32 %v766_v39, %v629_v23  ;;  %v768_v43 = vpop.f32.mrb[6].mxu0 }
 0x126   : > { %v908_v44 = vpop.f32.mrb[6].mxu1  ;;  %v911_v45 = vadd.f32 %v904_v36, %v771_v37  ;;  %v769_v46 = vpop.f32.mrb[7].mxu0 }
 0x127   : > { %v909_v47 = vpop.f32.mrb[7].mxu1  ;;  %v912_v48 = vadd.f32 %v906_v40, %v772_v41 }
 0x128   : > { %v925_v49 = vadd.f32 %v918_v38, %v911_v45 }
 0x129   : > { %v926_v50 = vadd.f32 %v922_v42, %v912_v48 }
 0x12a   : > { %v927_v51 = vmax.f32 %v925_v49, 0.0 }
 0x12b   : > { %v929_v52 = vsel %vm928_vm1, %v926_v50, -inf  ;;  %v940_v53 = vmul.f32 0.5, %v926_v50 }
 0x12c   : > { %v973_v54 = vpack.c.bf16 %v927_v51, %v927_v51  ;;  %930 = vmax.xlane.f32.xlu0 %v929_v52 }
 0x12d   : > { %1466 = vtanh.f32 %v940_v53 }
 0x12e   : > { %1308 = vmatmul.mubr.bf16.vlgmr.msra.gmra.mrb[8].mxu0 %v973_v54 }
 0x137   : > { %v1467_v55 = vpop.eup %1466 }
 0x138   : > { %v942_v56 = vadd.f32 1.0, %v1467_v55 }
 0x13a   : > { %v943_v57 = vmul.f32 0.5, %v942_v56 }
 0x13c   : > { %945 = vrot.lane.b32.xlu1 %v943_v57, %s1539_s22 }
 0x1ae   : > { %v946_v9 = vpop.permute.xlu1 %945 }
 0x1b9   : > { %v931_v58 = vpop.xlane.xlu0 %930 }
 0x1ba   : > { %v932_v59 = vsub.f32 %v926_v50, %v931_v58 }
 0x1bc   : > { %v933_v60 = vmul.f32 1.442695, %v932_v59 }
 0x1be   : > { %1468 = vpow2.f32 %v933_v60 }
 0x1c8   : > { %v1469_v61 = vpop.eup %1468 }
 0x1c9   : > { %v935_v62 = vsel %vm928_vm1, %v1469_v61, 0.0 }
 0x1ca   : > { %936 = vadd.xlane.f32.xlu0 %v935_v62 }
 0x201   : > { %v1079_v0 = vpop.f32.mrb[8].mxu0 }
 0x202   : > { %v1309_v1 = vpop.f32.mrb[9].mxu0 }
 0x203   : > { %v1082_v2 = vpop.f32.mrb[10].mxu0 }
 0x204   : > { %v1310_v3 = vpop.f32.mrb[11].mxu0 }
 0x257   : > { %v937_v4 = vpop.xlane.xlu0 %936 }
 0x258   : > { %1470 = vrcp.f32 %v937_v4 }
 0x262   : > { %v1471_v7 = vpop.eup %1470 }
 0x263   : > { %v939_v8 = vmul.f32 %v1471_v7, %v1469_v61 }
 0x265   : > { %v948_v10 = vmul.f32 %v946_v9, %v939_v8 }
 0x267   : > { %956 = vperm.xlu0 %1358, %v948_v10   ;;  %951 = vperm.xlu1 %1357, %v948_v10  }
 0x26b   : > { %1359 = vset.pattern.permute.xlu1 %v1541_v11  ;;  %1361 = vset.pattern.permute.xlu0 %v1542_v12 }
 0x26c   : > { %962 = vperm.xlu1 %1359, %v948_v10  }
 0x270   : > { %1360 = vset.pattern.permute.xlu1 %v1542_v12 }
 0x271   : > { %968 = vperm.xlu1 %1360, %v948_v10  }
 0x2e6   : > { %v952_v13 = vpop.permute.xlu1 %951  ;;  %v957_v14 = vpop.permute.xlu0 %956 }
 0x2e7   : > { %v959_v15 = vmul.f32 %v957_v14, %v1748_v33  ;;  %v954_v16 = vmul.f32 %v952_v13, %v1750_v34  ;;  %v1080_v33 = vadd.f32 %v1269_v20, %v1079_v0 }
 0x2e9   : > { %v960_v19 = vadd.f32 %v959_v15, %v954_v16 }
 0x2eb   : > { %v963_v17 = vpop.permute.xlu1 %962 }
 0x2ec   : > { %v965_v18 = vmul.f32 %v963_v17, %v1862_v5 }
 0x2ee   : > { %v966_v22 = vadd.f32 %v965_v18, %v960_v19 }
 0x2f0   : > { %v969_v21 = vpop.permute.xlu1 %968 }
 0x2f1   : > { %v971_v23 = vmul.f32 %v969_v21, %v1864_v6 }
 0x2f3   : > { %v972_v24 = vadd.f32 %v971_v23, %v966_v22 }
 0x2f5   : > { %v1085_v34 = vadd.f32 %v1080_v33, %v972_v24 }
 0x2f7   : > { %1086 = vst [vmem:[%s335_s13] sm:$0xff] %v1085_v34 }
 0x2f8   : > { %1485 = shalt.err (!%p1482_p3)
}
 0x2f9   : > { %s1486_s22 = scalar_lea.hbm %s1911_s21, 128  ;;  %s1490_s14 = scalar_lea.hbm %s1961_s8, 256 }
 0x2fa   : > { %p1487_p4 = scmp.ne.s32.totalorder %s1911_s21, %s1486_s22  ;;  %p1491_p9 = scmp.lt.u32.totalorder %s1911_s21, %s1961_s8 }
 0x2fb   : > { %p1492_p10 = scmp.lt.u32.totalorder %s1490_s14, %s1486_s22  ;;  %p1494_p12 = scmp.lt.u32.totalorder %s1486_s22, %s1911_s21 }
 0x2fc   : > { %p1488_p7 = pnand %p1487_p4, %p1627_p5 }
 0x2fd   : > { %p1493_p11 = por %p1492_p10, %p1491_p9 }
 0x2fe   : > { %p1489_p8 = pneg %p1488_p7 }
 0x2ff   : > { %p1495_p13 = por %p1494_p12, %p1493_p11 }
 0x301   : > { %p1496_p0 = pnand %p1495_p13, %p1489_p8 }
 0x303   : > { %1499 = shalt.err (!%p1496_p0)
}
 0x304   : > { %1311 = dma.vmem_to_hbm [thread:$0]  (%p1627_p5), %s1913_s17, 128, %s1911_s21, %s1088_s23  }
 0x305 PF: > { %p1317_p1 = scmp.ge.s32.totalorder %s1534_s30, 2  ;;  %s1113_s13 = sand.u32 1, %s1522_s27  }
 0x306   : > { %s1114_s19 = scalar_lea.sflag [#allocation3], %s1113_s13 }
 0x307   : > { %p1314_p2 = pnand %p1317_p1, %p1631_p6 }
 0x309   : > { %1517 = dma.done.wait (!%p1314_p2), %s1114_s19, 128  }
 0x30a   : > { %1519 = vsyncadd (!%p1314_p2), %s1114_s19, 4294967168  ;;  %s1967_s20 = sld [smem:[#allocation5_spill]]  ;;  %s1968_s29 = sld [smem:[#allocation6_spill]] }
 0x30b   : > { %p18_p3 = scmp.ge.s32.totalorder %s1614_s11, 4   ;;  %s1969_s27 = smov %s1526_s28 }
 0x30c   : > { %s1971_s30 = smov %s1614_s11 }
 0x30d   :  { %20 = sbr.rel (!%p18_p3) target bundleno = 3 (0x3), region = 96 }
 0x310   : > { %s1970_s28 = smov %s1967_s20 }
 0x314   :  { %1119 = vsyncpa [#allocation3], 1 }
 0x315   :  { %1121 = vsyncpa [#allocation3 + $0x1], 1 }

</bundles_post_ra>
